<compile_context>
chip_gen: v5e
topology: v5e:2x2
jax: 0.10.0
libtpu: 0.0.40
codegen_flags: <defaults>
</compile_context>

<pallas_src>
import jax
import jax.numpy as jnp
from jax.experimental import pallas as pl
from jax.experimental.pallas import tpu as pltpu


# ---------------------------------------------------------------------------
# Pallas kernel: one batch tile (TB rows), all weights resident in VMEM.
# ---------------------------------------------------------------------------
def _cvae_kernel(
    x_ref, oh_ref, eps_ref,                                  # batch-tiled inputs
    we_x_ref, wh_ref, bh_ref, btbl_ref, wd0_ref, wd1_ref, bd1_ref,  # resident
    recon_ref, ml_ref, zlv_ref,                              # batch-tiled outputs
):
    f32 = jnp.float32
    bf16 = jnp.bfloat16
    H = we_x_ref.shape[1]

    # Per-class biases: one tiny K=C one-hot matmul (exact select — 0/1 and the
    # table are bf16-representable), sliced at the clean H-lane boundary.
    bias = jnp.dot(oh_ref[...], btbl_ref[...], preferred_element_type=f32)  # (TB, H+Hd)
    enc_bias = bias[:, :H]
    dec_bias = bias[:, H:]

    # Encoder L0: relu(x @ We_x + (be + We_c[c]))
    h = jnp.dot(x_ref[...], we_x_ref[...], preferred_element_type=f32)
    h = jnp.maximum(h + enc_bias, 0.0)

    # Fused heads: ml = [mu | log_var], lane-dense (2L = 128 lanes).
    ml = jnp.dot(h.astype(bf16), wh_ref[...], preferred_element_type=f32) + bh_ref[...]

    # Packed reparameterize (f32): zlv = [log_var | z],  z = mu + eps*exp(0.5*lv).
    two_l = ml.shape[-1]
    half = two_l // 2
    upper = jax.lax.broadcasted_iota(jnp.int32, ml.shape, 1) >= half
    std_pack = jnp.exp(jnp.where(upper, 0.5 * ml, 0.0))       # [1 | exp(0.5*lv)]
    eps_pack = jnp.concatenate(                               # [0 | eps] built in VMEM
        [jnp.zeros((ml.shape[0], half), f32), eps_ref[...]], axis=-1)
    zlv = pltpu.roll(ml, shift=half, axis=1) + eps_pack * std_pack   # [lv | z]

    # Decoder L0: relu(zlv @ Wd0_pack + (bd0 + Wd0_c[c])); rows [0:L) of
    # Wd0_pack are zero so the log_var lanes of zlv contribute nothing.
    hd = jnp.dot(zlv.astype(bf16), wd0_ref[...], preferred_element_type=f32)
    hd = jnp.maximum(hd + dec_bias, 0.0)

    # Decoder L1: reference module *named* "sigmoid" is actually nn.ReLU().
    r = jnp.dot(hd.astype(bf16), wd1_ref[...], preferred_element_type=f32)
    r = jnp.maximum(r + bd1_ref[...], 0.0)

    recon_ref[...] = r.astype(recon_ref.dtype)
    ml_ref[...] = ml
    zlv_ref[...] = zlv


# ---------------------------------------------------------------------------
# Parameter construction (torch.nn.Linear-style uniform init), pre-packed:
# fused heads, zero-padded decoder weight, combined per-class bias table.
# ---------------------------------------------------------------------------
def _linear_params(key, in_f, out_f):
    kw, kb = jax.random.split(key)
    bound = 1.0 / jnp.sqrt(jnp.float32(in_f))
    w = jax.random.uniform(kw, (in_f, out_f), jnp.float32, -bound, bound)
    b = jax.random.uniform(kb, (1, out_f), jnp.float32, -bound, bound)
    return w, b


def make_cvae_params(key, encoder_layer_sizes, latent_size,
                     decoder_layer_sizes, num_labels):
    D, H = encoder_layer_sizes          # [feature_dim, hidden]
    Hd, Dd = decoder_layer_sizes        # [hidden, feature_dim]
    L, C = latent_size, num_labels
    keys = jax.random.split(key, 5)

    we_full, be = _linear_params(keys[0], D + C, H)      # encoder L0
    wm, bm = _linear_params(keys[1], H, L)               # linear_means
    wv, bv = _linear_params(keys[2], H, L)               # linear_log_var
    wd0_full, bd0 = _linear_params(keys[3], L + C, Hd)   # decoder L0
    wd1, bd1 = _linear_params(keys[4], Hd, Dd)           # decoder L1 ("sigmoid"=ReLU)

    we_x, we_c = we_full[:D], we_full[D:]
    wd0_z, wd0_c = wd0_full[:L], wd0_full[L:]

    # Combined per-class bias table (the one-hot matmuls folded into biases);
    # stored bf16 so the in-kernel one-hot select is bit-exact.
    bias_tbl = jnp.concatenate([we_c + be, wd0_c + bd0], axis=1)     # (C, H+Hd)

    return dict(
        # bf16 MXU operands (f32 accumulation inside the kernel).
        we_x=we_x.astype(jnp.bfloat16),                                     # (D, H)
        w_heads=jnp.concatenate([wm, wv], axis=1).astype(jnp.bfloat16),     # (H, 2L)
        wd0_pack=jnp.concatenate(
            [jnp.zeros((L, Hd), jnp.float32), wd0_z], axis=0
        ).astype(jnp.bfloat16),                                             # (2L, Hd)
        wd1=wd1.astype(jnp.bfloat16),                                       # (Hd, Dd)
        # f32 biases added post-matmul.
        b_heads=jnp.concatenate([bm, bv], axis=1),                          # (1, 2L)
        bd1=bd1,                                                            # (1, Dd)
        bias_tbl=bias_tbl.astype(jnp.bfloat16),                             # (C, H+Hd)
    )


def _round_up(a, m):
    return (a + m - 1) // m * m


def _cdiv(a, b):
    return -(-a // b)


# ---------------------------------------------------------------------------
# Wrapper: layout plumbing in plain JAX, hot path in the Pallas kernel.
# ---------------------------------------------------------------------------
def cvae_cifar_forward(x, c, eps, params):
    # Faithful to the reference: if x.dim() > 2: x = x.view(-1, 32*32)
    if x.ndim > 2:
        x = x.reshape(-1, 32 * 32)

    D, H = params["we_x"].shape
    two_l = params["w_heads"].shape[1]
    L = two_l // 2
    Hd, Dd = params["wd1"].shape
    C = params["bias_tbl"].shape[0]
    B = x.shape[0]

    x = x.astype(jnp.bfloat16)
    onehot = jax.nn.one_hot(c, C, dtype=jnp.bfloat16)       # (B, C)  ~32 B/row
    eps = eps.astype(jnp.float32)                           # (B, L)  256 B/row

    # Batch tile: HBM-bandwidth-bound kernel, so use big tiles (up to 1024
    # rows); keep >= 2 grid steps when B > 512 (v7x 2nd TensorCore) and keep
    # zero-padding < 16 rows per tile.
    nt = max(1, _cdiv(B, 1024))
    if nt == 1 and B > 512:
        nt = 2
    tb = _round_up(_cdiv(B, nt), 16)
    bp = _round_up(B, tb)

    def pad_rows(a):
        return a if a.shape[0] == bp else jnp.pad(a, ((0, bp - a.shape[0]), (0, 0)))

    x, onehot, eps = map(pad_rows, (x, onehot, eps))

    def batch_spec(feat):
        return pl.BlockSpec((tb, feat), lambda i: (i, 0))

    def const_spec(shape):
        return pl.BlockSpec(shape, lambda i, _n=len(shape): (0,) * _n)

    in_arrays = (x, onehot, eps,
                 params["we_x"], params["w_heads"], params["b_heads"],
                 params["bias_tbl"], params["wd0_pack"], params["wd1"], params["bd1"])
    in_specs = [batch_spec(D), batch_spec(C), batch_spec(L),
                const_spec((D, H)), const_spec((H, two_l)), const_spec((1, two_l)),
                const_spec((C, H + Hd)), const_spec((two_l, Hd)),
                const_spec((Hd, Dd)), const_spec((1, Dd))]

    out_shapes = (jax.ShapeDtypeStruct((bp, Dd), jnp.bfloat16),    # recon_x (bf16)
                  jax.ShapeDtypeStruct((bp, two_l), jnp.float32),  # [mu | log_var]
                  jax.ShapeDtypeStruct((bp, two_l), jnp.float32))  # [log_var | z]
    out_specs = (batch_spec(Dd), batch_spec(two_l), batch_spec(two_l))

    flops = 2 * bp * (C * (H + Hd) + D * H + H * two_l + two_l * Hd + Hd * Dd)
    bytes_in = sum(int(a.size) * a.dtype.itemsize for a in in_arrays)
    bytes_out = bp * (2 * Dd + 4 * two_l + 4 * two_l)

    recon, ml, zlv = pl.pallas_call(
        _cvae_kernel,
        out_shape=out_shapes,
        grid=(bp // tb,),
        in_specs=in_specs,
        out_specs=out_specs,
        compiler_params=pltpu.CompilerParams(
            dimension_semantics=("parallel",),
            vmem_limit_bytes=32 * 1024 * 1024),   # covers v5e's 16 MiB default
        cost_estimate=pl.CostEstimate(
            flops=flops,
            transcendentals=bp * two_l,
            bytes_accessed=bytes_in + bytes_out),
    )(*in_arrays)

    recon_x = recon[:B].astype(jnp.float32)
    means = ml[:B, :L]
    log_var = ml[:B, L:]
    z = zlv[:B, L:]
    return recon_x, means, log_var, z


if __name__ == "__main__":
    # Shapes consistent with the module's constructor:
    #   encoder_layer_sizes=[256, 128], latent_size=64,
    #   decoder_layer_sizes=[128, 256], class_dim=16
    B = 8
    encoder_layer_sizes = [256, 128]
    decoder_layer_sizes = [128, 256]
    latent_size = 64
    num_labels = 16

    root = jax.random.PRNGKey(0)
    k_x, k_c, k_eps, k_par = jax.random.split(root, 4)

    x = jax.random.normal(k_x, (B, encoder_layer_sizes[0]), jnp.float32)
    c = jax.random.randint(k_c, (B,), 0, num_labels)
    # TODO(synk): eps could be generated in-kernel with pltpu.prng_seed /
    # pltpu.stateful_normal (saves another 256 B/row); kept as an explicit
    # input so the reference random stream (torch.randn_like) can be matched.
    eps = jax.random.normal(k_eps, (B, latent_size), jnp.float32)

    params = make_cvae_params(k_par, encoder_layer_sizes, latent_size,
                              decoder_layer_sizes, num_labels)

    recon_x, means, log_var, z = cvae_cifar_forward(x, c, eps, params)
    jax.block_until_ready((recon_x, means, log_var, z))

    # Pure-JAX reference with identical bf16-matmul / f32-accumulate numerics.
    f32, bf16 = jnp.float32, jnp.bfloat16
    L = latent_size
    H = encoder_layer_sizes[1]
    enc_b = params["bias_tbl"][c, :H].astype(f32)
    dec_b = params["bias_tbl"][c, H:].astype(f32)
    h = jnp.maximum(jnp.dot(x.astype(bf16), params["we_x"],
                            preferred_element_type=f32) + enc_b, 0.0)
    ml_ref = jnp.dot(h.astype(bf16), params["w_heads"],
                     preferred_element_type=f32) + params["b_heads"]
    mu_ref, lv_ref = ml_ref[:, :L], ml_ref[:, L:]
    z_ref = mu_ref + eps * jnp.exp(0.5 * lv_ref)
    hd = jnp.maximum(jnp.dot(z_ref.astype(bf16), params["wd0_pack"][L:],
                             preferred_element_type=f32) + dec_b, 0.0)
    r_ref = jnp.maximum(jnp.dot(hd.astype(bf16), params["wd1"],
                                preferred_element_type=f32) + params["bd1"], 0.0)

    assert jnp.allclose(means, mu_ref, atol=2e-3, rtol=2e-3)
    assert jnp.allclose(log_var, lv_ref, atol=2e-3, rtol=2e-3)
    assert jnp.allclose(z, z_ref, atol=2e-3, rtol=2e-3)
    assert jnp.allclose(recon_x, r_ref, atol=3e-2, rtol=2e-2)

    print("KERNEL_OK")
</pallas_src>

<mosaic_0001>
module attributes {stable_mosaic.version = 11 : i64} {
  func.func @_cvae_kernel(%arg0: i32, %arg1: memref<16x256xbf16, #tpu.memory_space<vmem>>, %arg2: memref<16x16xbf16, #tpu.memory_space<vmem>>, %arg3: memref<16x64xf32, #tpu.memory_space<vmem>>, %arg4: memref<256x128xbf16, #tpu.memory_space<vmem>>, %arg5: memref<128x128xbf16, #tpu.memory_space<vmem>>, %arg6: memref<1x128xf32, #tpu.memory_space<vmem>>, %arg7: memref<16x256xbf16, #tpu.memory_space<vmem>>, %arg8: memref<128x128xbf16, #tpu.memory_space<vmem>>, %arg9: memref<128x256xbf16, #tpu.memory_space<vmem>>, %arg10: memref<1x256xf32, #tpu.memory_space<vmem>>, %arg11: memref<16x256xbf16, #tpu.memory_space<vmem>>, %arg12: memref<16x128xf32, #tpu.memory_space<vmem>>, %arg13: memref<16x128xf32, #tpu.memory_space<vmem>>) attributes {dimension_semantics = [#tpu.dimension_semantics<parallel>], iteration_bounds = array<i64: 1>, scalar_prefetch = 0 : i64, scratch_operands = 0 : i64, tpu.core_type = #tpu.core_type<tc>, window_params = [{transform_indices = @transform_0, window_bounds = array<i64: 16, 256>}, {transform_indices = @transform_1, window_bounds = array<i64: 16, 16>}, {transform_indices = @transform_2, window_bounds = array<i64: 16, 64>}, {pipeline_mode = #tpu.pipeline_mode<synchronous>, transform_indices = @transform_3, window_bounds = array<i64: 256, 128>}, {pipeline_mode = #tpu.pipeline_mode<synchronous>, transform_indices = @transform_4, window_bounds = array<i64: 128, 128>}, {pipeline_mode = #tpu.pipeline_mode<synchronous>, transform_indices = @transform_5, window_bounds = array<i64: 1, 128>}, {pipeline_mode = #tpu.pipeline_mode<synchronous>, transform_indices = @transform_6, window_bounds = array<i64: 16, 256>}, {pipeline_mode = #tpu.pipeline_mode<synchronous>, transform_indices = @transform_7, window_bounds = array<i64: 128, 128>}, {pipeline_mode = #tpu.pipeline_mode<synchronous>, transform_indices = @transform_8, window_bounds = array<i64: 128, 256>}, {pipeline_mode = #tpu.pipeline_mode<synchronous>, transform_indices = @transform_9, window_bounds = array<i64: 1, 256>}, {transform_indices = @transform_10, window_bounds = array<i64: 16, 256>}, {transform_indices = @transform_11, window_bounds = array<i64: 16, 128>}, {transform_indices = @transform_12, window_bounds = array<i64: 16, 128>}]} {
    %c0 = arith.constant 0 : index
    %c0_0 = arith.constant 0 : index
    %0 = vector.load %arg2[%c0, %c0_0] : memref<16x16xbf16, #tpu.memory_space<vmem>>, vector<16x16xbf16>
    %c0_1 = arith.constant 0 : index
    %c0_2 = arith.constant 0 : index
    %1 = vector.load %arg7[%c0_1, %c0_2] : memref<16x256xbf16, #tpu.memory_space<vmem>>, vector<16x256xbf16>
    %cst = arith.constant dense<0.000000e+00> : vector<16x256xf32>
    %2 = tpu.matmul %0, %1, %cst {dimension_numbers = #tpu.dot_dimension_numbers<[1], [0], [0], [1], [0, 0, 1, 1], [], []>} : vector<16x16xbf16>, vector<16x256xbf16>, vector<16x256xf32> -> vector<16x256xf32>
    %3 = vector.extract_strided_slice %2 {offsets = [0, 0], sizes = [16, 128], strides = [1, 1]} : vector<16x256xf32> to vector<16x128xf32>
    %4 = vector.extract_strided_slice %2 {offsets = [0, 128], sizes = [16, 128], strides = [1, 1]} : vector<16x256xf32> to vector<16x128xf32>
    %c0_3 = arith.constant 0 : index
    %c0_4 = arith.constant 0 : index
    %5 = vector.load %arg1[%c0_3, %c0_4] : memref<16x256xbf16, #tpu.memory_space<vmem>>, vector<16x256xbf16>
    %c0_5 = arith.constant 0 : index
    %c0_6 = arith.constant 0 : index
    %6 = vector.load %arg4[%c0_5, %c0_6] : memref<256x128xbf16, #tpu.memory_space<vmem>>, vector<256x128xbf16>
    %cst_7 = arith.constant dense<0.000000e+00> : vector<16x128xf32>
    %7 = tpu.matmul %5, %6, %cst_7 {dimension_numbers = #tpu.dot_dimension_numbers<[1], [0], [0], [1], [0, 0, 1, 1], [], []>} : vector<16x256xbf16>, vector<256x128xbf16>, vector<16x128xf32> -> vector<16x128xf32>
    %8 = arith.addf %7, %3 : vector<16x128xf32>
    %cst_8 = arith.constant 0.000000e+00 : f32
    %9 = vector.broadcast %cst_8 : f32 to vector<16x128xf32>
    %10 = arith.maximumf %8, %9 : vector<16x128xf32>
    %11 = arith.truncf %10 : vector<16x128xf32> to vector<16x128xbf16>
    %c0_9 = arith.constant 0 : index
    %c0_10 = arith.constant 0 : index
    %12 = vector.load %arg5[%c0_9, %c0_10] : memref<128x128xbf16, #tpu.memory_space<vmem>>, vector<128x128xbf16>
    %cst_11 = arith.constant dense<0.000000e+00> : vector<16x128xf32>
    %13 = tpu.matmul %11, %12, %cst_11 {dimension_numbers = #tpu.dot_dimension_numbers<[1], [0], [0], [1], [0, 0, 1, 1], [], []>} : vector<16x128xbf16>, vector<128x128xbf16>, vector<16x128xf32> -> vector<16x128xf32>
    %c0_12 = arith.constant 0 : index
    %c0_13 = arith.constant 0 : index
    %14 = vector.load %arg6[%c0_12, %c0_13] : memref<1x128xf32, #tpu.memory_space<vmem>>, vector<1x128xf32>
    %15 = vector.broadcast %14 : vector<1x128xf32> to vector<16x128xf32>
    %16 = arith.addf %13, %15 : vector<16x128xf32>
    %17 = tpu.iota {dimensions = array<i32: 1>} : vector<16x128xi32>
    %c64_i32 = arith.constant 64 : i32
    %18 = vector.broadcast %c64_i32 : i32 to vector<16x128xi32>
    %19 = arith.cmpi sge, %17, %18 : vector<16x128xi32>
    %cst_14 = arith.constant 5.000000e-01 : f32
    %20 = vector.broadcast %cst_14 : f32 to vector<16x128xf32>
    %21 = arith.mulf %20, %16 : vector<16x128xf32>
    %cst_15 = arith.constant 0.000000e+00 : f32
    %22 = vector.broadcast %cst_15 : f32 to vector<16x128xf32>
    %23 = arith.select %19, %21, %22 : vector<16x128xi1>, vector<16x128xf32>
    %24 = math.exp %23 : vector<16x128xf32>
    %cst_16 = arith.constant 0.000000e+00 : f32
    %25 = vector.broadcast %cst_16 : f32 to vector<16x64xf32>
    %c0_17 = arith.constant 0 : index
    %c0_18 = arith.constant 0 : index
    %26 = vector.load %arg3[%c0_17, %c0_18] : memref<16x64xf32, #tpu.memory_space<vmem>>, vector<16x64xf32>
    %27 = tpu.concatenate %25, %26 in 1 : vector<16x64xf32>, vector<16x64xf32> -> vector<16x128xf32>
    %c64_i32_19 = arith.constant 64 : i32
    %28 = tpu.dynamic_rotate %16 by %c64_i32_19 dim 1 : vector<16x128xf32>, i32 -> vector<16x128xf32>
    %29 = arith.mulf %27, %24 : vector<16x128xf32>
    %30 = arith.addf %28, %29 : vector<16x128xf32>
    %31 = arith.truncf %30 : vector<16x128xf32> to vector<16x128xbf16>
    %c0_20 = arith.constant 0 : index
    %c0_21 = arith.constant 0 : index
    %32 = vector.load %arg8[%c0_20, %c0_21] : memref<128x128xbf16, #tpu.memory_space<vmem>>, vector<128x128xbf16>
    %cst_22 = arith.constant dense<0.000000e+00> : vector<16x128xf32>
    %33 = tpu.matmul %31, %32, %cst_22 {dimension_numbers = #tpu.dot_dimension_numbers<[1], [0], [0], [1], [0, 0, 1, 1], [], []>} : vector<16x128xbf16>, vector<128x128xbf16>, vector<16x128xf32> -> vector<16x128xf32>
    %34 = arith.addf %33, %4 : vector<16x128xf32>
    %cst_23 = arith.constant 0.000000e+00 : f32
    %35 = vector.broadcast %cst_23 : f32 to vector<16x128xf32>
    %36 = arith.maximumf %34, %35 : vector<16x128xf32>
    %37 = arith.truncf %36 : vector<16x128xf32> to vector<16x128xbf16>
    %c0_24 = arith.constant 0 : index
    %c0_25 = arith.constant 0 : index
    %38 = vector.load %arg9[%c0_24, %c0_25] : memref<128x256xbf16, #tpu.memory_space<vmem>>, vector<128x256xbf16>
    %cst_26 = arith.constant dense<0.000000e+00> : vector<16x256xf32>
    %39 = tpu.matmul %37, %38, %cst_26 {dimension_numbers = #tpu.dot_dimension_numbers<[1], [0], [0], [1], [0, 0, 1, 1], [], []>} : vector<16x128xbf16>, vector<128x256xbf16>, vector<16x256xf32> -> vector<16x256xf32>
    %c0_27 = arith.constant 0 : index
    %c0_28 = arith.constant 0 : index
    %40 = vector.load %arg10[%c0_27, %c0_28] : memref<1x256xf32, #tpu.memory_space<vmem>>, vector<1x256xf32>
    %41 = vector.broadcast %40 : vector<1x256xf32> to vector<16x256xf32>
    %42 = arith.addf %39, %41 : vector<16x256xf32>
    %cst_29 = arith.constant 0.000000e+00 : f32
    %43 = vector.broadcast %cst_29 : f32 to vector<16x256xf32>
    %44 = arith.maximumf %42, %43 : vector<16x256xf32>
    %45 = arith.truncf %44 : vector<16x256xf32> to vector<16x256xbf16>
    %c0_30 = arith.constant 0 : index
    %c0_31 = arith.constant 0 : index
    %46 = vector.load %arg11[%c0_30, %c0_31] : memref<16x256xbf16, #tpu.memory_space<vmem>>, vector<16x256xbf16>
    tpu.vector_store %arg11[%c0_30, %c0_31], %45 {strides = array<i32>} : memref<16x256xbf16, #tpu.memory_space<vmem>>, vector<16x256xbf16>,
    %c0_32 = arith.constant 0 : index
    %c0_33 = arith.constant 0 : index
    %47 = vector.load %arg12[%c0_32, %c0_33] : memref<16x128xf32, #tpu.memory_space<vmem>>, vector<16x128xf32>
    tpu.vector_store %arg12[%c0_32, %c0_33], %16 {strides = array<i32>} : memref<16x128xf32, #tpu.memory_space<vmem>>, vector<16x128xf32>,
    %c0_34 = arith.constant 0 : index
    %c0_35 = arith.constant 0 : index
    %48 = vector.load %arg13[%c0_34, %c0_35] : memref<16x128xf32, #tpu.memory_space<vmem>>, vector<16x128xf32>
    tpu.vector_store %arg13[%c0_34, %c0_35], %30 {strides = array<i32>} : memref<16x128xf32, #tpu.memory_space<vmem>>, vector<16x128xf32>,
    return
  }
  func.func @transform_0(%arg0: i32) -> (i32, i32) {
    %c0_i32 = arith.constant 0 : i32
    %c0_i32_0 = arith.constant 0 : i32
    return %arg0, %c0_i32 : i32, i32
  }
  func.func @transform_1(%arg0: i32) -> (i32, i32) {
    %c0_i32 = arith.constant 0 : i32
    %c0_i32_0 = arith.constant 0 : i32
    return %arg0, %c0_i32 : i32, i32
  }
  func.func @transform_2(%arg0: i32) -> (i32, i32) {
    %c0_i32 = arith.constant 0 : i32
    %c0_i32_0 = arith.constant 0 : i32
    return %arg0, %c0_i32 : i32, i32
  }
  func.func @transform_3(%arg0: i32) -> (i32, i32) {
    %c0_i32 = arith.constant 0 : i32
    %c0_i32_0 = arith.constant 0 : i32
    %c0_i32_1 = arith.constant 0 : i32
    return %c0_i32, %c0_i32_0 : i32, i32
  }
  func.func @transform_4(%arg0: i32) -> (i32, i32) {
    %c0_i32 = arith.constant 0 : i32
    %c0_i32_0 = arith.constant 0 : i32
    %c0_i32_1 = arith.constant 0 : i32
    return %c0_i32, %c0_i32_0 : i32, i32
  }
  func.func @transform_5(%arg0: i32) -> (i32, i32) {
    %c0_i32 = arith.constant 0 : i32
    %c0_i32_0 = arith.constant 0 : i32
    %c0_i32_1 = arith.constant 0 : i32
    return %c0_i32, %c0_i32_0 : i32, i32
  }
  func.func @transform_6(%arg0: i32) -> (i32, i32) {
    %c0_i32 = arith.constant 0 : i32
    %c0_i32_0 = arith.constant 0 : i32
    %c0_i32_1 = arith.constant 0 : i32
    return %c0_i32, %c0_i32_0 : i32, i32
  }
  func.func @transform_7(%arg0: i32) -> (i32, i32) {
    %c0_i32 = arith.constant 0 : i32
    %c0_i32_0 = arith.constant 0 : i32
    %c0_i32_1 = arith.constant 0 : i32
    return %c0_i32, %c0_i32_0 : i32, i32
  }
  func.func @transform_8(%arg0: i32) -> (i32, i32) {
    %c0_i32 = arith.constant 0 : i32
    %c0_i32_0 = arith.constant 0 : i32
    %c0_i32_1 = arith.constant 0 : i32
    return %c0_i32, %c0_i32_0 : i32, i32
  }
  func.func @transform_9(%arg0: i32) -> (i32, i32) {
    %c0_i32 = arith.constant 0 : i32
    %c0_i32_0 = arith.constant 0 : i32
    %c0_i32_1 = arith.constant 0 : i32
    return %c0_i32, %c0_i32_0 : i32, i32
  }
  func.func @transform_10(%arg0: i32) -> (i32, i32) {
    %c0_i32 = arith.constant 0 : i32
    %c0_i32_0 = arith.constant 0 : i32
    return %arg0, %c0_i32 : i32, i32
  }
  func.func @transform_11(%arg0: i32) -> (i32, i32) {
    %c0_i32 = arith.constant 0 : i32
    %c0_i32_0 = arith.constant 0 : i32
    return %arg0, %c0_i32 : i32, i32
  }
  func.func @transform_12(%arg0: i32) -> (i32, i32) {
    %c0_i32 = arith.constant 0 : i32
    %c0_i32_0 = arith.constant 0 : i32
    return %arg0, %c0_i32 : i32, i32
  }
}

</mosaic_0001>

<bundles_post_ra>
// kernel: tpu_custom_call.1
= control target key start
LH: loop header
LB: loop body
LE: loop exit
PB: predicated region body
PF: predicated region fallthrough
CT: control target
= control target key end

     0   :  { %18 = vsyncpa [#allocation3], 0  ;;  %s1513_s0 = inlined_call_operand.hbm [shape: bf16[16,256], index: 0, kind: input, shape index: {}]   ;;  %s1514_s1 = inlined_call_operand.hbm [shape: bf16[16,16], index: 1, kind: input, shape index: {}]   ;;  %s1515_s2 = inlined_call_operand.hbm [shape: f32[16,64], index: 2, kind: input, shape index: {}]   ;;  %s1516_s3 = inlined_call_operand.hbm [shape: bf16[256,128], index: 3, kind: input, shape index: {}]   ;;  %s1517_s4 = inlined_call_operand.hbm [shape: bf16[128,128], index: 4, kind: input, shape index: {}]   ;;  %s1518_s5 = inlined_call_operand.vmem [shape: f32[1,128], index: 5, kind: input, shape index: {}]   ;;  %s1519_s6 = inlined_call_operand.hbm [shape: bf16[16,256], index: 6, kind: input, shape index: {}]   ;;  %s1520_s7 = inlined_call_operand.hbm [shape: bf16[128,128], index: 7, kind: input, shape index: {}]   ;;  %s1521_s8 = inlined_call_operand.hbm [shape: bf16[128,256], index: 8, kind: input, shape index: {}]   ;;  %s1522_s9 = inlined_call_operand.vmem [shape: f32[1,256], index: 9, kind: input, shape index: {}]   ;;  %s1523_s10 = inlined_call_operand.hbm [shape: bf16[16,256], index: 10, kind: output, shape index: {0}]   ;;  %s1524_s11 = inlined_call_operand.hbm [shape: f32[16,128], index: 11, kind: output, shape index: {1}]   ;;  %s1525_s12 = inlined_call_operand.hbm [shape: f32[16,128], index: 12, kind: output, shape index: {2}]  }
   0x1   :  { %19 = vsyncpa [#allocation6], 0 }
   0x2   :  { %20 = vsyncpa [#allocation9], 0 }
   0x3   :  { %21 = vsyncpa [#allocation12], 0 }
   0x4   :  { %22 = vsyncpa [#allocation15], 0 }
   0x5   :  { %23 = vsyncpa [#allocation4], 0  ;;  %s42_s23 = sshll.u32 %s1514_s1, 4  ;;  %s43_s23 = int_to_ptr.hbm [resolvable:$true] %s42_s23 }
   0x6   :  { %24 = vsyncpa [#allocation18], 0  ;;  %s1349_s24 = smov [#allocation5]   ;;  %s68_s28 = sshll.u32 %s1516_s3, 4  ;;  %s69_s28 = int_to_ptr.hbm [resolvable:$true] %s68_s28 }
   0x7   :  { %s44_s25 = sshll.u32 %s1349_s24, 4  ;;  %s1350_s29 = smov 64   ;;  %s45_s25 = int_to_ptr.vmem [resolvable:$true] %s44_s25 }
   0x8   :  { %s1351_s30 = smov 4   ;;  %s1352_s13 = smov [#allocation8]  }
   0x9   :  { %50 = dma.hbm_to_vmem [thread:$0]  %s43_s23, 128, %s45_s25, [#allocation6], %s1350_s29, %s1350_s29, %s1351_s30  }
   0xa   :  { %s70_s14 = sshll.u32 %s1352_s13, 4  ;;  %s96_s16 = sshll.u32 %s1519_s6, 4  ;;  %s71_s14 = int_to_ptr.vmem [resolvable:$true] %s70_s14  ;;  %s97_s16 = int_to_ptr.hbm [resolvable:$true] %s96_s16 }
   0xb   :  { %76 = dma.hbm_to_vmem [thread:$0]  %s69_s28, 2048, %s71_s14, [#allocation9], %s1350_s29, %s1350_s29, %s1351_s30  }
   0xc   :  { %s1353_s3 = smov [#allocation11]   ;;  %s29_s20 = sshll.u32 %s1513_s0, 4  ;;  %s30_s20 = int_to_ptr.hbm [resolvable:$true] %s29_s20 }
   0xd   :  { %s98_s17 = sshll.u32 %s1353_s3, 4  ;;  %s1354_s21 = smov 128   ;;  %s99_s17 = int_to_ptr.vmem [resolvable:$true] %s98_s17 }
   0xe   :  { %s1355_s22 = smov 8   ;;  %s1356_s23 = smov [#allocation2]  }
   0xf   :  { %104 = dma.hbm_to_vmem [thread:$0]  %s97_s16, 256, %s99_s17, [#allocation12], %s1354_s21, %s1354_s21, %s1355_s22  }
  0x10   :  { %s31_s24 = sshll.u32 %s1356_s23, 4  ;;  %s55_s6 = sshll.u32 %s1515_s2, 4  ;;  %s32_s24 = int_to_ptr.vmem [resolvable:$true] %s31_s24  ;;  %s56_s6 = int_to_ptr.hbm [resolvable:$true] %s55_s6 }
  0x11   :  { %37 = dma.hbm_to_vmem [thread:$0]  %s30_s20, 256, %s32_s24, [#allocation3], %s1354_s21, %s1354_s21, %s1355_s22  }
  0x12   :  { %s81_s28 = sshll.u32 %s1517_s4, 4  ;;  %s1357_s13 = smov [#allocation7]   ;;  %s82_s28 = int_to_ptr.hbm [resolvable:$true] %s81_s28 }
  0x13   :  { %s57_s14 = sshll.u32 %s1357_s13, 4  ;;  %s1358_s1 = smov [#allocation10]   ;;  %s58_s14 = int_to_ptr.vmem [resolvable:$true] %s57_s14 }
  0x14   :  { %63 = dma.hbm_to_vmem [thread:$0]  %s56_s6, 256, %s58_s14, [#allocation6], %s1354_s21, %s1354_s21, %s1355_s22  }
  0x15   :  { %s83_s2 = sshll.u32 %s1358_s1, 4  ;;  %s109_s3 = sshll.u32 %s1520_s7, 4  ;;  %s84_s2 = int_to_ptr.vmem [resolvable:$true] %s83_s2  ;;  %s110_s3 = int_to_ptr.hbm [resolvable:$true] %s109_s3 }
  0x16   :  { %89 = dma.hbm_to_vmem [thread:$0]  %s82_s28, 1024, %s84_s2, [#allocation9], %s1350_s29, %s1350_s29, %s1351_s30  }
  0x17   :  { %s122_s18 = sshll.u32 %s1521_s8, 4  ;;  %s1359_s19 = smov [#allocation13]   ;;  %s123_s18 = int_to_ptr.hbm [resolvable:$true] %s122_s18 }
  0x18   :  { %s111_s20 = sshll.u32 %s1359_s19, 4  ;;  %s1360_s23 = smov [#allocation14]   ;;  %s112_s20 = int_to_ptr.vmem [resolvable:$true] %s111_s20 }
  0x19   :  { %117 = dma.hbm_to_vmem [thread:$0]  %s110_s3, 1024, %s112_s20, [#allocation12], %s1350_s29, %s1350_s29, %s1351_s30  }
  0x1a   :  { %s124_s7 = sshll.u32 %s1360_s23, 4  ;;  %s125_s7 = int_to_ptr.vmem [resolvable:$true] %s124_s7 }
  0x1b   :  { %130 = dma.hbm_to_vmem [thread:$0]  %s123_s18, 2048, %s125_s7, [#allocation15], %s1354_s21, %s1354_s21, %s1355_s22  }
  0x1c   :  { %1335 = dma.done.wait [#allocation3], 256  }
  0x1d   :  { %1336 = vsyncadd [#allocation3], 4294967040 }
  0x1e   :  { %1337 = dma.done.wait [#allocation6], 384  }
  0x1f   :  { %1338 = vsyncadd [#allocation6], 4294966912 }
  0x20   :  { %1339 = dma.done.wait [#allocation9], 3072  }
  0x21   :  { %1340 = vsyncadd [#allocation9], 4294964224 }
  0x22   :  { %1341 = dma.done.wait [#allocation12], 1280  }
  0x23   :  { %1342 = vsyncadd [#allocation12], 4294966016 }
  0x24   :  { %1343 = dma.done.wait [#allocation15], 2048  }
  0x25   :  { %1344 = vsyncadd [#allocation15], 4294965248  ;;  %v1010_v0 = vld [vmem:[#allocation8 + $0x38] sm:$0xff]  ;;  %v1009_v2 = vld [vmem:[#allocation8 + $0x30] sm:$0xff]  ;;  %vm185_vm0 = vcmask 130048   ;;  %vm491_vm2 = vcmask 523264  }
  0x26   :  { %v1018_v1 = vld [vmem:[#allocation8 + $0x78] sm:$0xff]  ;;  %357 = vmatpush.bf16.msra.mxu2 %v1010_v0  ;;  %v1017_v3 = vld [vmem:[#allocation8 + $0x70] sm:$0xff]  ;;  %v790_v4 = vld [vmem:[#allocation11] sm:$0xf]  ;;  %v470_v0 = vlaneseq  ;;  %s745_s26 = sshll.u32 %s1524_s11, 4  ;;  %s1362_s6 = smov [#allocation19]   ;;  %s746_s26 = int_to_ptr.hbm [resolvable:$true] %s745_s26 }
  0x27   :  { %371 = vmatpush.bf16.msra.mxu3 %v1018_v1  ;;  %v1000_v5 = vld [vmem:[#allocation11 + $0x4] sm:$0xf0]  ;;  %v1026_v10 = vld [vmem:[#allocation10 + $0x38] sm:$0xff]  ;;  %v1025_v11 = vld [vmem:[#allocation10 + $0x30] sm:$0xff]  ;;  %s756_s0 = sshll.u32 %s1362_s6, 4  ;;  %s758_s13 = sshll.u32 %s1525_s12, 4  ;;  %s757_s0 = int_to_ptr.vmem [resolvable:$true] %s756_s0  ;;  %s759_s13 = int_to_ptr.hbm [resolvable:$true] %s758_s13 }
  0x28   :  { %v1008_v6 = vld [vmem:[#allocation8 + $0x28] sm:$0xff]  ;;  %v791_v8 = vor.u32 %v1000_v5, %v790_v4  ;;  %v1007_v12 = vld [vmem:[#allocation8 + $0x20] sm:$0xff]  ;;  %v1006_v14 = vld [vmem:[#allocation8 + $0x18] sm:$0xff]  ;;  %v471_v1 = vand.u32 127, %v470_v0  ;;  %s1363_s12 = smov [#allocation16]  }
  0x29   :  { %v1016_v7 = vld [vmem:[#allocation8 + $0x68] sm:$0xff]  ;;  %v1015_v13 = vld [vmem:[#allocation8 + $0x60] sm:$0xff]  ;;  %v1014_v15 = vld [vmem:[#allocation8 + $0x58] sm:$0xff]  ;;  %s730_s1 = sshll.u32 %s1363_s12, 4  ;;  %s731_s1 = int_to_ptr.vmem [resolvable:$true] %s730_s1 }
  0x2a   :  { %358 = vmatpush.bf16.msra.mxu2 %v1009_v2  ;;  %v1477_v9 = vld [vmem:[#allocation5] sm:$0xff]  ;;  %196 = vmatpush.bf16.msra.mxu0 %v791_v8  ;;  %v1005_v16 = vld [vmem:[#allocation8 + $0x10] sm:$0xff]  ;;  %v1003_v20 = vld [vmem:[#allocation8] sm:$0xff]  ;;  %vm472_vm1 = vcmp.ge.s32.totalorder %v471_v1, 64 }
  0x2b   :  { %372 = vmatpush.bf16.msra.mxu3 %v1017_v3  ;;  %v1013_v17 = vld [vmem:[#allocation8 + $0x50] sm:$0xff]  ;;  %v1004_v18 = vld [vmem:[#allocation8 + $0x8] sm:$0xff]  ;;  %v1011_v21 = vld [vmem:[#allocation8 + $0x40] sm:$0xff] }
  0x2c   :  { %v1012_v19 = vld [vmem:[#allocation8 + $0x48] sm:$0xff]  ;;  %v800_v22 = vld [vmem:[#allocation2] sm:$0xf]  ;;  %v1002_v23 = vld [vmem:[#allocation2 + $0x4] sm:$0xf0] }
  0x2d   :  { %796 = vmatmul.msk.bf16.vlgmr.msra.gmra.mxu0 %vm185_vm0, %v1477_v9  ;;  %v1001_v24 = vld [vmem:[#allocation2 + $0x4] sm:$0xf]  ;;  %v802_v25 = vld [vmem:[#allocation2 + $0x8] sm:$0xf0]  ;;  %v801_v26 = vor.u32 %v1002_v23, %v800_v22  ;;  %v1024_v28 = vld [vmem:[#allocation10 + $0x28] sm:$0xff] }
  0x2e   :  { %456 = vmatpush.bf16.msrb.mxu0 %v1026_v10  ;;  %359 = vmatpush.bf16.msra.mxu2 %v1008_v6  ;;  %v805_v27 = vor.u32 %v1001_v24, %v802_v25  ;;  %v1023_v29 = vld [vmem:[#allocation10 + $0x20] sm:$0xff]  ;;  %v1022_v30 = vld [vmem:[#allocation10 + $0x18] sm:$0xff]  ;;  %v1021_v31 = vld [vmem:[#allocation10 + $0x10] sm:$0xff] }
  0x2f   :  { %373 = vmatpush.bf16.msra.mxu3 %v1016_v7  ;;  %v1020_v32 = vld [vmem:[#allocation10 + $0x8] sm:$0xff]  ;;  %v1019_v33 = vld [vmem:[#allocation10] sm:$0xff]  ;;  %v481_v34 = vld [vmem:[#allocation7] sm:$0xff] }
  0x30   :  { %485 = vrot.lane.b32.xlu0 %v481_v34, %s1350_s29  ;;  %v482_v35 = vld [vmem:[#allocation7 + $0x8] sm:$0xff]  ;;  %v999_v49 = vld [vmem:[#allocation11 + $0x4] sm:$0xf]  ;;  %v792_v50 = vld [vmem:[#allocation11 + $0x8] sm:$0xf0] }
  0x31   :  { %v1034_v51 = vld [vmem:[#allocation13 + $0x38] sm:$0xff]  ;;  %v795_v52 = vor.u32 %v999_v49, %v792_v50  ;;  %v1033_v53 = vld [vmem:[#allocation13 + $0x30] sm:$0xff]  ;;  %v1066_v54 = vld [vmem:[%s1518_s5] ss:$0 sm:$0xff]  ;;  %s1361_s5 = smov [#allocation17]  }
  0x32   :  { %457 = vmatpush.bf16.msrb.mxu0 %v1025_v11  ;;  %360 = vmatpush.bf16.msra.mxu2 %v1007_v12  ;;  %v1032_v55 = vld [vmem:[#allocation13 + $0x28] sm:$0xff]  ;;  %v1031_v58 = vld [vmem:[#allocation13 + $0x20] sm:$0xff]  ;;  %v1030_v59 = vld [vmem:[#allocation13 + $0x18] sm:$0xff] }
  0x33   :  { %374 = vmatpush.bf16.msra.mxu3 %v1015_v13  ;;  %210 = vmatpush.bf16.msra.mxu1 %v795_v52  ;;  %v1029_v62 = vld [vmem:[#allocation13 + $0x10] sm:$0xff]  ;;  %v1028_v63 = vld [vmem:[#allocation13 + $0x8] sm:$0xff]  ;;  %v1027_v2 = vld [vmem:[#allocation13] sm:$0xff] }
  0x34   :  { %v992_v4 = vld [vmem:[#allocation14 + $0x70] sm:$0xf]  ;;  %v1050_v5 = vld [vmem:[#allocation14 + $0x74] sm:$0xf0]  ;;  %v1049_v6 = vld [vmem:[#allocation14 + $0x74] sm:$0xf] }
  0x35   :  { %v993_v7 = vor.u32 %v1050_v5, %v992_v4  ;;  %v994_v8 = vld [vmem:[#allocation14 + $0x78] sm:$0xf0]  ;;  %v1048_v10 = vld [vmem:[#allocation14 + $0x64] sm:$0xf0]  ;;  %v1047_v13 = vld [vmem:[#allocation14 + $0x64] sm:$0xf] }
  0x36   :  { %361 = vmatpush.bf16.msra.mxu2 %v1006_v14  ;;  %458 = vmatpush.bf16.msrb.mxu0 %v1024_v28  ;;  %v997_v12 = vor.u32 %v1049_v6, %v994_v8  ;;  %v986_v14 = vld [vmem:[#allocation14 + $0x68] sm:$0xf0]  ;;  %v968_v25 = vld [vmem:[#allocation14 + $0x40] sm:$0xf]  ;;  %v962_v50 = vld [vmem:[#allocation14 + $0x38] sm:$0xf0] }
  0x37   :  { %375 = vmatpush.bf16.msra.mxu3 %v1014_v15  ;;  %567 = vmatpush.bf16.msrb.mxu1 %v1034_v51  ;;  %v970_v28 = vld [vmem:[#allocation14 + $0x48] sm:$0xf0]  ;;  %v952_v52 = vld [vmem:[#allocation14 + $0x20] sm:$0xf]  ;;  %v1036_v1 = vld [vmem:[#allocation14 + $0x4] sm:$0xf0] }
  0x38   :  { %487 = vrot.lane.b32.xlu0 %v482_v35, %s1350_s29  ;;  %797 = vmatmul.msk.bf16.vlgmr.msra.gmra.mxu1 %vm185_vm0, %v1477_v9  ;;  %v984_v9 = vld [vmem:[#allocation14 + $0x60] sm:$0xf]  ;;  %v938_v4 = vld [vmem:[#allocation14 + $0x8] sm:$0xf0] }
  0x39   :  { %v985_v15 = vor.u32 %v1048_v10, %v984_v9  ;;  %v936_v0 = vld [vmem:[#allocation14] sm:$0xf] }
  0x3a   :  { %362 = vmatpush.bf16.msra.mxu2 %v1005_v16  ;;  %459 = vmatpush.bf16.msrb.mxu0 %v1023_v29  ;;  %v989_v16 = vor.u32 %v1047_v13, %v986_v14 }
  0x3b   :  { %376 = vmatpush.bf16.msra.mxu3 %v1013_v17  ;;  %568 = vmatpush.bf16.msrb.mxu1 %v1033_v53  ;;  %v976_v17 = vld [vmem:[#allocation14 + $0x50] sm:$0xf]  ;;  %v1040_v53 = vld [vmem:[#allocation14 + $0x24] sm:$0xf0] }
  0x3e   :  { %363 = vmatpush.bf16.msra.mxu2 %v1004_v18  ;;  %460 = vmatpush.bf16.msrb.mxu0 %v1022_v30  ;;  %v1046_v18 = vld [vmem:[#allocation14 + $0x54] sm:$0xf0] }
  0x3f   :  { %377 = vmatpush.bf16.msra.mxu3 %v1012_v19  ;;  %569 = vmatpush.bf16.msrb.mxu1 %v1032_v55  ;;  %v977_v23 = vor.u32 %v1046_v18, %v976_v17  ;;  %v953_v55 = vor.u32 %v1040_v53, %v952_v52 }
  0x42   :  { %364 = vmatpush.bf16.msra.mxu2 %v1003_v20  ;;  %461 = vmatpush.bf16.msrb.mxu0 %v1021_v31  ;;  %v1045_v20 = vld [vmem:[#allocation14 + $0x54] sm:$0xf] }
  0x43   :  { %378 = vmatpush.bf16.msra.mxu3 %v1011_v21  ;;  %570 = vmatpush.bf16.msrb.mxu1 %v1031_v58  ;;  %v978_v21 = vld [vmem:[#allocation14 + $0x58] sm:$0xf0]  ;;  %v944_v58 = vld [vmem:[#allocation14 + $0x10] sm:$0xf] }
  0x44   :  { %v981_v24 = vor.u32 %v1045_v20, %v978_v21 }
  0x45   :  { %365 = vmatmul.bf16.vlgmr.msra.gmra.mxu2 %v801_v26  ;;  %v1044_v26 = vld [vmem:[#allocation14 + $0x44] sm:$0xf0] }
  0x46   :  { %379 = vmatmul.bf16.vlgmr.msra.gmra.mxu3 %v805_v27  ;;  %462 = vmatpush.bf16.msrb.mxu0 %v1020_v32  ;;  %v1043_v27 = vld [vmem:[#allocation14 + $0x44] sm:$0xf]  ;;  %v969_v31 = vor.u32 %v1044_v26, %v968_v25 }
  0x47   :  { %571 = vmatpush.bf16.msrb.mxu1 %v1030_v59  ;;  %686 = vmatpush.bf16.msrb.mxu2 %v993_v7  ;;  %v973_v32 = vor.u32 %v1043_v27, %v970_v28  ;;  %v1038_v59 = vld [vmem:[#allocation14 + $0x14] sm:$0xf0] }
  0x48   :  { %700 = vmatpush.bf16.msrb.mxu3 %v997_v12 }
  0x4a   :  { %463 = vmatpush.bf16.msrb.mxu0 %v1019_v33 }
  0x4b   :  { %572 = vmatpush.bf16.msrb.mxu1 %v1029_v62  ;;  %687 = vmatpush.bf16.msrb.mxu2 %v985_v15  ;;  %v946_v62 = vld [vmem:[#allocation14 + $0x18] sm:$0xf0]  ;;  %v600_v15 = vld [vmem:[%s1522_s9] sm:$0x3]  ;;  %s732_s9 = sshll.u32 %s1523_s10, 4  ;;  %s733_s9 = int_to_ptr.hbm [resolvable:$true] %s732_s9 }
  0x4c   :  { %701 = vmatpush.bf16.msrb.mxu3 %v989_v16  ;;  %v602_v16 = vperm.slane %v600_v15, 0  ;;  %v603_v17 = vperm.slane %v600_v15, 1 }
  0x4f   :  { %573 = vmatpush.bf16.msrb.mxu1 %v1028_v63  ;;  %688 = vmatpush.bf16.msrb.mxu2 %v977_v23 }
  0x50   :  { %702 = vmatpush.bf16.msrb.mxu3 %v981_v24 }
  0x53   :  { %574 = vmatpush.bf16.msrb.mxu1 %v1027_v2  ;;  %689 = vmatpush.bf16.msrb.mxu2 %v969_v31  ;;  %v1035_v2 = vld [vmem:[#allocation14 + $0x4] sm:$0xf] }
  0x54   :  { %703 = vmatpush.bf16.msrb.mxu3 %v973_v32  ;;  %v941_v5 = vor.u32 %v1035_v2, %v938_v4 }
  0xa2   :  { %v486_v30 = vpop.permute.xlu0 %485 }
  0xa3   :  { %v492_v35 = vsel %vm491_vm2, 0.0, %v486_v30 }
  0xaa   :  { %v198_v36 = vpop.f32.mrf.mxu0 }
  0xb2   :  { %v200_v40 = vpop.f32.mrf.mxu0 }
  0xb5   :  { %v212_v6 = vpop.f32.mrf.mxu1 }
  0xbd   :  { %v214_v7 = vpop.f32.mrf.mxu1 }
  0xc8   :  { %v366_v37 = vpop.f32.mrf.mxu2 }
  0xc9   :  { %v380_v38 = vpop.f32.mrf.mxu3  ;;  %v367_v39 = vadd.f32 %v366_v37, %v198_v36 }
  0xcb   :  { %v381_v42 = vadd.f32 %v380_v38, %v367_v39  ;;  %v488_v38 = vpop.permute.xlu0 %487 }
  0xcd   :  { %v385_v46 = vmax.f32 %v381_v42, 0.0 }
  0xd0   :  { %v368_v41 = vpop.f32.mrf.mxu2 }
  0xd1   :  { %v369_v43 = vadd.f32 %v368_v41, %v200_v40  ;;  %v382_v44 = vpop.f32.mrf.mxu3  ;;  %v493_v41 = vsel %vm491_vm2, 0.0, %v488_v38 }
  0xd3   :  { %v383_v45 = vadd.f32 %v382_v44, %v369_v43 }
  0xd5   :  { %v386_v47 = vmax.f32 %v383_v45, 0.0 }
  0xd7   :  { %v387_v48 = vpack.c.bf16 %v386_v47, %v385_v46  ;;  %v960_v46 = vld [vmem:[#allocation14 + $0x30] sm:$0xf]  ;;  %v1042_v47 = vld [vmem:[#allocation14 + $0x34] sm:$0xf0] }
  0xd8   :  { %v961_v49 = vor.u32 %v1042_v47, %v960_v46 }
  0xd9   :  { %464 = vmatmul.bf16.vlgmr.msrb.gmra.mxu0 %v387_v48  ;;  %v1041_v48 = vld [vmem:[#allocation14 + $0x34] sm:$0xf] }
  0xda   :  { %v965_v51 = vor.u32 %v1041_v48, %v962_v50  ;;  %690 = vmatpush.bf16.msrb.mxu2 %v961_v49 }
  0xdc   :  { %704 = vmatpush.bf16.msrb.mxu3 %v965_v51 }
  0xde   :  { %691 = vmatpush.bf16.msrb.mxu2 %v953_v55 }
 0x156   :  { %v465_v56 = vpop.f32.mrf.mxu0 }
 0x157   :  { %v466_v57 = vadd.f32 %v1066_v54, %v465_v56  ;;  %v954_v56 = vld [vmem:[#allocation14 + $0x28] sm:$0xf0] }
 0x159   :  { %722 = vst [vmem:[#allocation17] sm:$0xff] %v466_v57  ;;  %494 = vrot.lane.b32.xlu1 %v466_v57, %s1350_s29  ;;  %v473_v3 = vmul.f32 0.5, %v466_v57 }
 0x15b   :  { %v475_v11 = vsel %vm472_vm1, %v473_v3, 0.0  ;;  %v937_v3 = vor.u32 %v1036_v1, %v936_v0 }
 0x15c   :  { %v477_v19 = vmul.f32 1.442695, %v475_v11 }
 0x15e   :  { %v467_v60 = vpop.f32.mrf.mxu0  ;;  %1067 = vpow2.f32 %v477_v19 }
 0x15f   :  { %v468_v61 = vadd.f32 %v1066_v54, %v467_v60  ;;  %v1039_v54 = vld [vmem:[#allocation14 + $0x24] sm:$0xf]  ;;  %v1037_v60 = vld [vmem:[#allocation14 + $0x14] sm:$0xf] }
 0x160   :  { %v957_v57 = vor.u32 %v1039_v54, %v954_v56  ;;  %v949_v63 = vor.u32 %v1037_v60, %v946_v62 }
 0x161   :  { %723 = vst [vmem:[#allocation17 + $0x8] sm:$0xff] %v468_v61  ;;  %496 = vrot.lane.b32.xlu1 %v468_v61, %s1350_s29  ;;  %v474_v22 = vmul.f32 0.5, %v468_v61  ;;  %v945_v61 = vor.u32 %v1038_v59, %v944_v58  ;;  %s743_s29 = sshll.u32 %s1361_s5, 4  ;;  %s744_s29 = int_to_ptr.vmem [resolvable:$true] %s743_s29 }
 0x162   :  { %705 = vmatpush.bf16.msrb.mxu3 %v957_v57  ;;  %751 = dma.vmem_to_hbm [thread:$0]  %s744_s29, 256, %s746_s26, [#allocation18], %s1354_s21, %s1354_s21, %s1355_s22  }
 0x163   :  { %v476_v29 = vsel %vm472_vm1, %v474_v22, 0.0  ;;  %692 = vmatpush.bf16.msrb.mxu2 %v945_v61 }
 0x164   :  { %v479_v33 = vmul.f32 1.442695, %v476_v29  ;;  %v1068_v34 = vpop.eup %1067 }
 0x165   :  { %v498_v36 = vmul.f32 %v1068_v34, %v492_v35 }
 0x166   :  { %1069 = vpow2.f32 %v479_v33  ;;  %706 = vmatpush.bf16.msrb.mxu3 %v949_v63 }
 0x167   :  { %693 = vmatpush.bf16.msrb.mxu2 %v937_v3 }
 0x16a   :  { %707 = vmatpush.bf16.msrb.mxu3 %v941_v5 }
 0x16c   :  { %v1070_v40 = vpop.eup %1069 }
 0x16d   :  { %v499_v42 = vmul.f32 %v1070_v40, %v493_v41 }
 0x1cb   :  { %v495_v37 = vpop.permute.xlu1 %494 }
 0x1cc   :  { %v500_v39 = vadd.f32 %v498_v36, %v495_v37 }
 0x1ce   :  { %724 = vst [vmem:[#allocation19] sm:$0xff] %v500_v39 }
 0x1d3   :  { %v497_v43 = vpop.permute.xlu1 %496 }
 0x1d4   :  { %v501_v44 = vadd.f32 %v499_v42, %v497_v43 }
 0x1d6   :  { %v502_v45 = vpack.c.bf16 %v501_v44, %v500_v39  ;;  %725 = vst [vmem:[#allocation19 + $0x8] sm:$0xff] %v501_v44 }
 0x1d7   :  { %764 = dma.vmem_to_hbm [thread:$0]  %s757_s0, 256, %s759_s13, [#allocation18], %s1354_s21, %s1354_s21, %s1355_s22  }
 0x1d8   :  { %575 = vmatmul.bf16.vlgmr.msrb.gmra.mxu1 %v502_v45 }
 0x255   :  { %v576_v8 = vpop.f32.mrf.mxu1 }
 0x256   :  { %v577_v9 = vadd.f32 %v576_v8, %v212_v6 }
 0x258   :  { %v581_v12 = vmax.f32 %v577_v9, 0.0 }
 0x25d   :  { %v578_v10 = vpop.f32.mrf.mxu1 }
 0x25e   :  { %v579_v11 = vadd.f32 %v578_v10, %v214_v7 }
 0x260   :  { %v582_v13 = vmax.f32 %v579_v11, 0.0 }
 0x262   :  { %v583_v14 = vpack.c.bf16 %v582_v13, %v581_v12 }
 0x264   :  { %694 = vmatmul.bf16.vlgmr.msrb.gmra.mxu2 %v583_v14  ;;  %708 = vmatmul.bf16.vlgmr.msrb.gmra.mxu3 %v583_v14 }
 0x2e7   :  { %v695_v18 = vpop.f32.mrf.mxu2  ;;  %v709_v19 = vpop.f32.mrf.mxu3 }
 0x2e8   :  { %v696_v20 = vadd.f32 %v695_v18, %v602_v16  ;;  %v710_v21 = vadd.f32 %v709_v19, %v603_v17 }
 0x2ea   :  { %v714_v22 = vmax.f32 %v696_v20, 0.0  ;;  %v715_v23 = vmax.f32 %v710_v21, 0.0 }
 0x2ec   :  { %v718_v24 = vpack.c.bf16 %v715_v23, %v714_v22 }
 0x2ee   :  { %720 = vst [vmem:[#allocation16] sm:$0xff] %v718_v24 }
 0x2ef   :  { %v697_v25 = vpop.f32.mrf.mxu2  ;;  %v711_v26 = vpop.f32.mrf.mxu3 }
 0x2f0   :  { %v698_v27 = vadd.f32 %v697_v25, %v602_v16  ;;  %v712_v28 = vadd.f32 %v711_v26, %v603_v17 }
 0x2f2   :  { %v716_v29 = vmax.f32 %v698_v27, 0.0  ;;  %v717_v30 = vmax.f32 %v712_v28, 0.0 }
 0x2f4   :  { %v719_v31 = vpack.c.bf16 %v717_v30, %v716_v29 }
 0x2f6   :  { %721 = vst [vmem:[#allocation16 + $0x8] sm:$0xff] %v719_v31 }
 0x2f7   :  { %738 = dma.vmem_to_hbm [thread:$0]  %s731_s1, 256, %s733_s9, [#allocation4], %s1354_s21, %s1354_s21, %s1355_s22  }
 0x2f8   :  { %1345 = dma.done.wait [#allocation4], 256  }
 0x2f9   :  { %1346 = vsyncadd [#allocation4], 4294967040 }
 0x2fa   :  { %1347 = dma.done.wait [#allocation18], 512  }
 0x2fb   :  { %1348 = vsyncadd [#allocation18], 4294966784 }
 0x2fc   :  { %777 = vsyncpa [#allocation3], 1 }
 0x2fd   :  { %778 = vsyncpa [#allocation6], 1 }
 0x2fe   :  { %779 = vsyncpa [#allocation9], 1 }
 0x2ff   :  { %780 = vsyncpa [#allocation12], 1 }
 0x300   :  { %781 = vsyncpa [#allocation15], 1 }
 0x301   :  { %782 = vsyncpa [#allocation4], 1 }
 0x302   :  { %783 = vsyncpa [#allocation18], 1 }

</bundles_post_ra>
